<compile_context>
chip_gen: v7x
topology: tpu7x:2x2x1
jax: 0.10.0
libtpu: 0.0.40
codegen_flags: <defaults>
</compile_context>

<pallas_src>
import functools
import math

import jax
import jax.numpy as jnp
from jax import lax
from jax.experimental import pallas as pl
from jax.experimental.pallas import tpu as pltpu


_LANES = 128                      # last block dim: exactly 128 lanes
_MAX_TILE_F = 2048                # sublane rows/tile -> 2048*128*4B = 1 MiB f32
_RESIDENT_STD_BUDGET = 4 * 1024 * 1024   # keep std table VMEM-resident if <= 4 MiB


def _fmix32(h):
    """murmur3 finalizer: uint32 -> uint32, full avalanche (portable int ops)."""
    h = h ^ (h >> jnp.uint32(16))
    h = h * jnp.uint32(0x85EBCA6B)
    h = h ^ (h >> jnp.uint32(13))
    h = h * jnp.uint32(0xC2B2AE35)
    h = h ^ (h >> jnp.uint32(16))
    return h


def _bits_to_uniform(bits):
    """uint32 bits -> f32 uniform in (0, 1) using 23 high-quality bits."""
    v = (bits >> jnp.uint32(9)).astype(jnp.int32).astype(jnp.float32)
    return (v + 0.5) * jnp.float32(1.0 / 8388608.0)      # / 2^23


_TWO_PI = 6.283185307179586


def _cos_2pi(t):
    """cos(2*pi*t) for t in [0, 1) with only mul/add/abs/where (no trig op)."""
    s = t - 0.5                        # cos(2pi t) = -cos(2pi s), s in [-0.5, 0.5)
    w = jnp.abs(s)                     # cos is even
    flip = w > 0.25
    v = jnp.where(flip, 0.5 - w, w)    # reduce angle to [0, pi/2]
    x = v * _TWO_PI
    x2 = x * x
    p = jnp.float32(2.4801587301587302e-05)     # cos Taylor coeffs on [0, pi/2]
    p = p * x2 - jnp.float32(1.3888888888888889e-03)
    p = p * x2 + jnp.float32(4.1666666666666664e-02)
    p = p * x2 - jnp.float32(0.5)
    p = p * x2 + jnp.float32(1.0)
    return jnp.where(flip, p, -p)


def _noise_kernel(alpha, tile_f, nf, resident_std,
                  seed_ref, y_ref, x_ref, std_ref, o_ref):
    # seed_ref, y_ref: scalar-prefetch SMEM refs
    # x_ref / o_ref:   (1, TILE_F, 128) tile of the current sample
    # std_ref:         resident: (num_classes*nf, TILE_F, 128) whole table
    #                  gather:   (1, TILE_F, 128) class tile picked by index_map
    b = pl.program_id(0)          # sample index
    f = pl.program_id(1)          # feature-tile index

    # --- counter-based Gaussian noise (portable: Mosaic + interpret) ---------
    # Stream base mixes (seed, sample, feature-tile) with large odd constants so
    # nearby seeds / samples / tiles never share a stream.
    base = (seed_ref[0].astype(jnp.uint32) * jnp.uint32(0x9E3779B1)
            + b.astype(jnp.uint32) * jnp.uint32(0x85EBCA77)
            + f.astype(jnp.uint32) * jnp.uint32(0xC2B2AE3D))
    rows = lax.broadcasted_iota(jnp.int32, (tile_f, _LANES), 0)
    cols = lax.broadcasted_iota(jnp.int32, (tile_f, _LANES), 1)
    ctr = base + (rows * _LANES + cols).astype(jnp.uint32)
    u1 = _bits_to_uniform(_fmix32(ctr))
    u2 = _bits_to_uniform(_fmix32(ctr ^ jnp.uint32(0x27D4EB2F)))

    # Box-Muller; alpha (trace-time hyperparameter) folded into the radius.
    r = jnp.sqrt(jnp.log(u1) * jnp.float32(-2.0 * alpha * alpha))
    noise = r * _cos_2pi(u2)                     # ~ alpha * N(0, 1)

    if resident_std:
        # std table resident in VMEM (constant block index -> DMA'd once);
        # gather the class tile with a single dynamic leading index.
        std_tile = std_ref[y_ref[b] * nf + f]
    else:
        # std tile was already gathered by the BlockSpec index_map.
        std_tile = std_ref[0]

    x = x_ref[0].astype(jnp.float32)
    o_ref[0] = (x + std_tile.astype(jnp.float32) * noise).astype(o_ref.dtype)


def noise_layer_forward(x, new_y, std, alpha, seed=0):
    """x: (B, C, H, W); new_y: (B,) int labels; std: (num_classes, C, H, W)."""
    B = x.shape[0]
    feat_shape = x.shape[1:]
    num_classes = std.shape[0]
    assert std.shape[1:] == feat_shape, (std.shape, x.shape)

    D = math.prod(feat_shape)
    F = -(-D // _LANES)                          # rows of 128 lanes
    tile_f = F if F <= _MAX_TILE_F else _MAX_TILE_F
    nf = -(-F // tile_f)                         # feature tiles per sample
    fp = nf * tile_f
    dp = fp * _LANES                             # padded feature size

    x2 = x.reshape(B, D)
    std2 = std.reshape(num_classes, D)
    if dp != D:                                  # pad to a whole number of tiles
        x2 = jnp.pad(x2, ((0, 0), (0, dp - D)))
        std2 = jnp.pad(std2, ((0, 0), (0, dp - D)))
    x3 = x2.reshape(B, fp, _LANES)

    # Resident std cuts HBM traffic 3*D -> ~2*D bytes/sample; budget stays well
    # under the 32 MiB scoped-VMEM default (<= 2x4 MiB std + ~4 MiB x/out tiles).
    std_bytes = num_classes * fp * _LANES * std2.dtype.itemsize
    resident = std_bytes <= _RESIDENT_STD_BUDGET

    if resident:
        std_in = std2.reshape(num_classes * nf, tile_f, _LANES)
        std_spec = pl.BlockSpec((num_classes * nf, tile_f, _LANES),
                                lambda b, f, seed, y: (0, 0, 0))
    else:
        std_in = std2.reshape(num_classes, fp, _LANES)
        std_spec = pl.BlockSpec((1, tile_f, _LANES),
                                lambda b, f, seed, y: (y[b], f, 0))

    kernel = functools.partial(_noise_kernel, float(alpha), tile_f, nf, resident)
    out = pl.pallas_call(
        kernel,
        out_shape=jax.ShapeDtypeStruct((B, fp, _LANES), x.dtype),
        grid_spec=pltpu.PrefetchScalarGridSpec(
            num_scalar_prefetch=2,               # (seed, newY) prefetched to SMEM
            grid=(B, nf),                        # batch x feature tiles
            in_specs=[
                pl.BlockSpec((1, tile_f, _LANES), lambda b, f, seed, y: (b, f, 0)),
                std_spec,
            ],
            out_specs=pl.BlockSpec((1, tile_f, _LANES),
                                   lambda b, f, seed, y: (b, f, 0)),
        ),
        # Both axes independent -> shardable across v7x's 2 TensorCores.
        compiler_params=pltpu.CompilerParams(
            dimension_semantics=("parallel", "parallel")),
    )(jnp.asarray([seed], dtype=jnp.int32), new_y.astype(jnp.int32), x3, std_in)

    out = out.reshape(B, dp)
    if dp != D:
        out = out[:, :D]
    return out.reshape(x.shape)


# TODO(synk): calculate_class_mean is training-time statistics bookkeeping (per-class
# mean/std over a dataloader); it is not part of forward, so std is an explicit input.


if __name__ == "__main__":
    B, C, H, W = 2, 4, 16, 16
    num_classes = 4
    alpha = 0.5

    key = jax.random.PRNGKey(0)
    kx, kstd, ky = jax.random.split(key, 3)

    x = jax.random.normal(kx, (B, C, H, W), dtype=jnp.float32)
    # Synthetic per-class std (what calculate_class_mean would have produced).
    std = jnp.abs(jax.random.normal(kstd, (num_classes, C, H, W),
                                    dtype=jnp.float32)) + 0.1
    new_y = jax.random.randint(ky, (B,), 0, num_classes, dtype=jnp.int32)

    out = noise_layer_forward(x, new_y, std, alpha, seed=42)
    out = jax.block_until_ready(out)

    assert out.shape == x.shape
    assert out.dtype == x.dtype
    assert bool(jnp.all(jnp.isfinite(out)))
    assert bool(jnp.any(jnp.abs(out - x) > 0.0))

    # Implied noise (out - x) / (alpha * std[newY]) should be ~N(0, 1).
    z = (out - x) / (alpha * std[new_y])
    z_mean = float(jnp.mean(z))
    z_std = float(jnp.std(z))
    assert abs(z_mean) < 0.25, z_mean
    assert 0.7 < z_std < 1.3, z_std

    print("KERNEL_OK")
</pallas_src>

<mosaic_0001>
module attributes {stable_mosaic.version = 11 : i64} {
  func.func @_noise_kernel(%arg0: i32, %arg1: i32, %arg2: memref<1xi32, #tpu.memory_space<smem>>, %arg3: memref<2xi32, #tpu.memory_space<smem>>, %arg4: memref<1x8x128xf32, #tpu.memory_space<vmem>>, %arg5: memref<4x8x128xf32, #tpu.memory_space<vmem>>, %arg6: memref<1x8x128xf32, #tpu.memory_space<vmem>>) attributes {dimension_semantics = [#tpu.dimension_semantics<parallel>, #tpu.dimension_semantics<parallel>], iteration_bounds = array<i64: 2, 1>, scalar_prefetch = 2 : i64, scratch_operands = 0 : i64, tpu.core_type = #tpu.core_type<tc>, window_params = [{transform_indices = @transform_0, window_bounds = array<i64: 1, 8, 128>}, {pipeline_mode = #tpu.pipeline_mode<synchronous>, transform_indices = @transform_1, window_bounds = array<i64: 4, 8, 128>}, {transform_indices = @transform_2, window_bounds = array<i64: 1, 8, 128>}]} {
    %c0 = arith.constant 0 : index
    %0 = memref.load %arg2[%c0] : memref<1xi32, #tpu.memory_space<smem>>
    %c-1640531535_i32 = arith.constant -1640531535 : i32
    %1 = arith.muli %0, %c-1640531535_i32 : i32
    %c-2048144777_i32 = arith.constant -2048144777 : i32
    %2 = arith.muli %arg0, %c-2048144777_i32 : i32
    %3 = arith.addi %1, %2 : i32
    %c-1028477379_i32 = arith.constant -1028477379 : i32
    %4 = arith.muli %arg1, %c-1028477379_i32 : i32
    %5 = arith.addi %3, %4 : i32
    %6 = tpu.iota {dimensions = array<i32: 0>} : vector<8x128xi32>
    %7 = tpu.iota {dimensions = array<i32: 1>} : vector<8x128xi32>
    %c128_i32 = arith.constant 128 : i32
    %8 = vector.broadcast %c128_i32 : i32 to vector<8x128xi32>
    %9 = arith.muli %6, %8 : vector<8x128xi32>
    %10 = arith.addi %9, %7 : vector<8x128xi32>
    %11 = vector.broadcast %5 : i32 to vector<8x128xi32>
    %12 = arith.addi %11, %10 : vector<8x128xi32>
    %c16_i32 = arith.constant 16 : i32
    %13 = vector.broadcast %c16_i32 : i32 to vector<8x128xi32>
    %14 = arith.shrui %12, %13 : vector<8x128xi32>
    %15 = arith.xori %12, %14 : vector<8x128xi32>
    %c-2048144789_i32 = arith.constant -2048144789 : i32
    %16 = vector.broadcast %c-2048144789_i32 : i32 to vector<8x128xi32>
    %17 = arith.muli %15, %16 : vector<8x128xi32>
    %c13_i32 = arith.constant 13 : i32
    %18 = vector.broadcast %c13_i32 : i32 to vector<8x128xi32>
    %19 = arith.shrui %17, %18 : vector<8x128xi32>
    %20 = arith.xori %17, %19 : vector<8x128xi32>
    %c-1028477387_i32 = arith.constant -1028477387 : i32
    %21 = vector.broadcast %c-1028477387_i32 : i32 to vector<8x128xi32>
    %22 = arith.muli %20, %21 : vector<8x128xi32>
    %c16_i32_0 = arith.constant 16 : i32
    %23 = vector.broadcast %c16_i32_0 : i32 to vector<8x128xi32>
    %24 = arith.shrui %22, %23 : vector<8x128xi32>
    %25 = arith.xori %22, %24 : vector<8x128xi32>
    %c9_i32 = arith.constant 9 : i32
    %26 = vector.broadcast %c9_i32 : i32 to vector<8x128xi32>
    %27 = arith.shrui %25, %26 : vector<8x128xi32>
    %28 = arith.sitofp %27 : vector<8x128xi32> to vector<8x128xf32>
    %cst = arith.constant 5.000000e-01 : f32
    %29 = vector.broadcast %cst : f32 to vector<8x128xf32>
    %30 = arith.addf %28, %29 : vector<8x128xf32>
    %cst_1 = arith.constant 1.1920929E-7 : f32
    %31 = vector.broadcast %cst_1 : f32 to vector<8x128xf32>
    %32 = arith.mulf %30, %31 : vector<8x128xf32>
    %c668265263_i32 = arith.constant 668265263 : i32
    %33 = vector.broadcast %c668265263_i32 : i32 to vector<8x128xi32>
    %34 = arith.xori %12, %33 : vector<8x128xi32>
    %c16_i32_2 = arith.constant 16 : i32
    %35 = vector.broadcast %c16_i32_2 : i32 to vector<8x128xi32>
    %36 = arith.shrui %34, %35 : vector<8x128xi32>
    %37 = arith.xori %34, %36 : vector<8x128xi32>
    %c-2048144789_i32_3 = arith.constant -2048144789 : i32
    %38 = vector.broadcast %c-2048144789_i32_3 : i32 to vector<8x128xi32>
    %39 = arith.muli %37, %38 : vector<8x128xi32>
    %c13_i32_4 = arith.constant 13 : i32
    %40 = vector.broadcast %c13_i32_4 : i32 to vector<8x128xi32>
    %41 = arith.shrui %39, %40 : vector<8x128xi32>
    %42 = arith.xori %39, %41 : vector<8x128xi32>
    %c-1028477387_i32_5 = arith.constant -1028477387 : i32
    %43 = vector.broadcast %c-1028477387_i32_5 : i32 to vector<8x128xi32>
    %44 = arith.muli %42, %43 : vector<8x128xi32>
    %c16_i32_6 = arith.constant 16 : i32
    %45 = vector.broadcast %c16_i32_6 : i32 to vector<8x128xi32>
    %46 = arith.shrui %44, %45 : vector<8x128xi32>
    %47 = arith.xori %44, %46 : vector<8x128xi32>
    %c9_i32_7 = arith.constant 9 : i32
    %48 = vector.broadcast %c9_i32_7 : i32 to vector<8x128xi32>
    %49 = arith.shrui %47, %48 : vector<8x128xi32>
    %50 = arith.sitofp %49 : vector<8x128xi32> to vector<8x128xf32>
    %cst_8 = arith.constant 5.000000e-01 : f32
    %51 = vector.broadcast %cst_8 : f32 to vector<8x128xf32>
    %52 = arith.addf %50, %51 : vector<8x128xf32>
    %cst_9 = arith.constant 1.1920929E-7 : f32
    %53 = vector.broadcast %cst_9 : f32 to vector<8x128xf32>
    %54 = arith.mulf %52, %53 : vector<8x128xf32>
    %55 = math.log %32 : vector<8x128xf32>
    %cst_10 = arith.constant -5.000000e-01 : f32
    %56 = vector.broadcast %cst_10 : f32 to vector<8x128xf32>
    %57 = arith.mulf %55, %56 : vector<8x128xf32>
    %58 = math.sqrt %57 : vector<8x128xf32>
    %cst_11 = arith.constant 5.000000e-01 : f32
    %59 = vector.broadcast %cst_11 : f32 to vector<8x128xf32>
    %60 = arith.subf %54, %59 : vector<8x128xf32>
    %61 = math.absf %60 : vector<8x128xf32>
    %cst_12 = arith.constant 2.500000e-01 : f32
    %62 = vector.broadcast %cst_12 : f32 to vector<8x128xf32>
    %63 = arith.cmpf ogt, %61, %62 : vector<8x128xf32>
    %cst_13 = arith.constant 5.000000e-01 : f32
    %64 = vector.broadcast %cst_13 : f32 to vector<8x128xf32>
    %65 = arith.subf %64, %61 : vector<8x128xf32>
    %66 = arith.select %63, %65, %61 : vector<8x128xi1>, vector<8x128xf32>
    %cst_14 = arith.constant 6.28318548 : f32
    %67 = vector.broadcast %cst_14 : f32 to vector<8x128xf32>
    %68 = arith.mulf %66, %67 : vector<8x128xf32>
    %69 = arith.mulf %68, %68 : vector<8x128xf32>
    %cst_15 = arith.constant 2.48015876E-5 : f32
    %70 = vector.broadcast %cst_15 : f32 to vector<8x128xf32>
    %71 = arith.mulf %70, %69 : vector<8x128xf32>
    %cst_16 = arith.constant 0.00138888892 : f32
    %72 = vector.broadcast %cst_16 : f32 to vector<8x128xf32>
    %73 = arith.subf %71, %72 : vector<8x128xf32>
    %74 = arith.mulf %73, %69 : vector<8x128xf32>
    %cst_17 = arith.constant 0.0416666679 : f32
    %75 = vector.broadcast %cst_17 : f32 to vector<8x128xf32>
    %76 = arith.addf %74, %75 : vector<8x128xf32>
    %77 = arith.mulf %76, %69 : vector<8x128xf32>
    %cst_18 = arith.constant 5.000000e-01 : f32
    %78 = vector.broadcast %cst_18 : f32 to vector<8x128xf32>
    %79 = arith.subf %77, %78 : vector<8x128xf32>
    %80 = arith.mulf %79, %69 : vector<8x128xf32>
    %cst_19 = arith.constant 1.000000e+00 : f32
    %81 = vector.broadcast %cst_19 : f32 to vector<8x128xf32>
    %82 = arith.addf %80, %81 : vector<8x128xf32>
    %cst_20 = arith.constant 0.000000e+00 : f32
    %83 = vector.broadcast %cst_20 : f32 to vector<8x128xf32>
    %84 = arith.subf %83, %82 : vector<8x128xf32>
    %85 = arith.select %63, %82, %84 : vector<8x128xi1>, vector<8x128xf32>
    %86 = arith.mulf %58, %85 : vector<8x128xf32>
    %87 = arith.index_cast %arg0 : i32 to index
    %88 = memref.load %arg3[%87] : memref<2xi32, #tpu.memory_space<smem>>
    %c1_i32 = arith.constant 1 : i32
    %89 = arith.muli %88, %c1_i32 : i32
    %90 = arith.addi %89, %arg1 : i32
    %91 = arith.index_cast %90 : i32 to index
    %c0_21 = arith.constant 0 : index
    %c0_22 = arith.constant 0 : index
    %92 = vector.load %arg5[%91, %c0_21, %c0_22] : memref<4x8x128xf32, #tpu.memory_space<vmem>>, vector<1x8x128xf32>
    %93 = vector.shape_cast %92 : vector<1x8x128xf32> to vector<8x128xf32>
    %c0_23 = arith.constant 0 : index
    %c0_24 = arith.constant 0 : index
    %c0_25 = arith.constant 0 : index
    %94 = vector.load %arg4[%c0_23, %c0_24, %c0_25] : memref<1x8x128xf32, #tpu.memory_space<vmem>>, vector<1x8x128xf32>
    %95 = vector.shape_cast %94 : vector<1x8x128xf32> to vector<8x128xf32>
    %96 = arith.mulf %93, %86 : vector<8x128xf32>
    %97 = arith.addf %95, %96 : vector<8x128xf32>
    %c0_26 = arith.constant 0 : index
    %c0_27 = arith.constant 0 : index
    %c0_28 = arith.constant 0 : index
    %98 = vector.load %arg6[%c0_26, %c0_27, %c0_28] : memref<1x8x128xf32, #tpu.memory_space<vmem>>, vector<1x8x128xf32>
    %99 = vector.shape_cast %98 : vector<1x8x128xf32> to vector<8x128xf32>
    %100 = vector.shape_cast %97 : vector<8x128xf32> to vector<1x8x128xf32>
    tpu.vector_store %arg6[%c0_26, %c0_27, %c0_28], %100 {strides = array<i32>} : memref<1x8x128xf32, #tpu.memory_space<vmem>>, vector<1x8x128xf32>,
    return
  }
  func.func @transform_0(%arg0: i32, %arg1: i32, %arg2: memref<1xi32, #tpu.memory_space<smem>>, %arg3: memref<2xi32, #tpu.memory_space<smem>>) -> (i32, i32, i32) {
    %c0_i32 = arith.constant 0 : i32
    %c0_i32_0 = arith.constant 0 : i32
    return %arg0, %arg1, %c0_i32 : i32, i32, i32
  }
  func.func @transform_1(%arg0: i32, %arg1: i32, %arg2: memref<1xi32, #tpu.memory_space<smem>>, %arg3: memref<2xi32, #tpu.memory_space<smem>>) -> (i32, i32, i32) {
    %c0_i32 = arith.constant 0 : i32
    %c0_i32_0 = arith.constant 0 : i32
    %c0_i32_1 = arith.constant 0 : i32
    %c0_i32_2 = arith.constant 0 : i32
    return %c0_i32, %c0_i32_0, %c0_i32_1 : i32, i32, i32
  }
  func.func @transform_2(%arg0: i32, %arg1: i32, %arg2: memref<1xi32, #tpu.memory_space<smem>>, %arg3: memref<2xi32, #tpu.memory_space<smem>>) -> (i32, i32, i32) {
    %c0_i32 = arith.constant 0 : i32
    %c0_i32_0 = arith.constant 0 : i32
    return %arg0, %arg1, %c0_i32 : i32, i32, i32
  }
}

</mosaic_0001>

<bundles_post_ra>
// kernel: tpu_custom_call.1
= control target key start
LH: loop header
LB: loop body
LE: loop exit
PB: predicated region body
PF: predicated region fallthrough
CT: control target
= control target key end

     0   :  { %s905_s0 = inlined_call_operand.<no memory space> [shape: s32[1], index: 0, kind: input, shape index: {}]   ;;  %s906_s1 = inlined_call_operand.vmem [shape: s32[2], index: 1, kind: input, shape index: {}]   ;;  %s907_s2 = inlined_call_operand.hbm [shape: f32[2,8,128], index: 2, kind: input, shape index: {}]   ;;  %s908_s3 = inlined_call_operand.hbm [shape: f32[4,8,128], index: 3, kind: input, shape index: {}]   ;;  %s909_s4 = inlined_call_operand.hbm [shape: f32[2,8,128], index: 4, kind: output, shape index: {}]  }
   0x1   :  { %9 = sst [smem:[#allocation3]] %s905_s0  ;;  %s10_s19 = sshll.u32 %s906_s1, 4  ;;  %s11_s19 = int_to_ptr.vmem [resolvable:$true] %s10_s19 }
   0x2   :  { %s483_s20 = scalar_lea.vmem %s11_s19, 16  ;;  %p488_p1 = scmp.lt.s32.totalorder %s11_s19, %s11_s19 }
   0x3   :  { %p484_p0 = scmp.ne.s32.totalorder %s11_s19, %s483_s20  ;;  %p489_p2 = scmp.lt.s32.totalorder %s483_s20, %s483_s20 }
   0x5   :  { %p490_p3 = por %p489_p2, %p488_p1 }
   0x7   :  { %p491_p4 = pnand %p490_p3, %p484_p0 }
   0x9   :  { %494 = shalt.err (!%p491_p4)  }
   0xa   :  { %s643_s21 = smov [#allocation4]  }
   0xb   :  { %13 = dma.vmem_to_smem %s11_s19, 16, %s643_s21, [#allocation2] }
   0xc   :  { %605 = dma.done.wait [#allocation2], 16 }
   0xd   :  { %606 = vsyncadd [#allocation2], 4294967280 }
   0xe   :  { %15 = sfence }
   0xf   :  { %16 = vsyncpa [#allocation6], 0 }
  0x10   :  { %18 = vsyncpa [#allocation6 + $0x1], 0 }
  0x11   :  { %19 = vsyncpa [#allocation9], 0 }
  0x12   :  { %20 = vsyncpa [#allocation7], 0 }
  0x13   :  { %22 = vsyncpa [#allocation7 + $0x1], 0  ;;  %s680_s0 = smov 0   ;;  %s682_s1 = smov 0  }
  0x14   :  { %s684_s22 = smov 0   ;;  %s686_s23 = smov 0  }
  0x15   :  { %s688_s24 = smov 0   ;;  %s690_s25 = smov 0  }
  0x16 LB: > { %s384_s26 = sadd.s32 4294967295, %s641_s25   ;;  %s385_s27 = sadd.s32 4294967294, %s641_s25   ;;  %s641_s25 = sphi %s690_s25, %s28_s25   ;;  %s637_s24 = sphi %s688_s24, %s933_s24   ;;  %s633_s23 = sphi %s686_s23, %s932_s23   ;;  %s629_s22 = sphi %s684_s22, %s931_s22   ;;  %s625_s1 = sphi %s682_s1, %s930_s1   ;;  %s621_s0 = sphi %s680_s0, %s929_s0  }
  0x17   : > { %p62_p5 = scmp.ne.s32.totalorder %s625_s1, %s621_s0  ;;  %p714_p6 = scmp.eq.s32.totalorder %s384_s26, 0 }
  0x18   : > { %p718_p7 = scmp.eq.s32.totalorder %s384_s26, 1  ;;  %p115_p8 = scmp.eq.s32.totalorder %s385_s27, 1 }
  0x19   : > { %s914_s28 = scalar_select %p714_p6, 1, 0 }
  0x1a   : > { %s915_s29 = scalar_select %p718_p7, 1, 0 }
  0x1b   : > { %p724_p9 = por %p714_p6, %p62_p5  ;;  %p386_p10 = scmp.ge.s32.totalorder %s641_s25, 1 }
  0x1c   : > { %p729_p11 = por %p115_p8, %p62_p5  ;;  %p122_p12 = scmp.lt.s32.totalorder %s641_s25, 3 }
  0x1d   : > { %s916_s30 = scalar_select %p724_p9, 1, 0 }
  0x1e   : > { %s917_s5 = scalar_select %p729_p11, 1, 0 }
  0x1f   : > { %p734_p13 = pnand %p386_p10, %p122_p12  ;;  %s644_s7 = smov [#allocation8]  }
  0x20   : > { %s134_s8 = sshll.u32 %s644_s7, 4  ;;  %s40_s10 = sadd.s32 1, %s637_s24  ;;  %s135_s8 = int_to_ptr.vmem [resolvable:$true] %s134_s8 }
  0x21   : > { %s918_s6 = scalar_select %p734_p13, 1, 0 }
  0x22   : > { %p411_p0 = pneg %p734_p13  ;;  %s495_s13 = scalar_lea.hbm %s908_s3, 512 }
  0x23   : > { %p496_p3 = scmp.ne.s32.totalorder %s908_s3, %s495_s13  ;;  %p502_p10 = scmp.lt.u32.totalorder %s495_s13, %s908_s3 }
  0x24   : > { %p743_p2 = pnand %p411_p0, %p714_p6 }
  0x26   : > { %p497_p4 = pneg %p743_p2 }
  0x28   : > { %p498_p5 = pnand %p497_p4, %p496_p3 }
  0x2a   : > { %p499_p8 = pneg %p498_p5 }
  0x2c   : > { %p504_p12 = pnand %p502_p10, %p499_p8 }
  0x2e   : > { %507 = shalt.err (!%p504_p12)
}
  0x2f   : > { %s508_s18 = scalar_lea.vmem %s135_s8, 512  ;;  %p516_p6 = scmp.lt.s32.totalorder %s135_s8, %s135_s8 }
  0x30   : > { %p509_p0 = scmp.ne.s32.totalorder %s135_s8, %s508_s18  ;;  %p517_p9 = scmp.lt.s32.totalorder %s508_s18, %s508_s18 }
  0x32   : > { %p511_p1 = pnand %p509_p0, %p497_p4  ;;  %p518_p13 = por %p517_p9, %p516_p6 }
  0x34   : > { %p512_p11 = pneg %p511_p1 }
  0x36   : > { %p519_p7 = pnand %p518_p13, %p512_p11 }
  0x38   : > { %522 = shalt.err (!%p519_p7)
}
  0x39   : > { %s645_s19 = smov 128   ;;  %s646_s20 = smov 8  }
  0x3a   : > { %414 = dma.hbm_to_vmem [thread:$0]  (!%p743_p2), %s908_s3, 512, %s135_s8, [#allocation9], %s645_s19, %s645_s19, %s646_s20  }
  0x3b   : > { %p42_p6 = scmp.ge.s32.totalorder %s40_s10, 2  ;;  %s49_s27 = sadd.s32 1, %s629_s22 }
  0x3c   : > { %p56_p7 = scmp.ne.s32.totalorder %s629_s22, %s625_s1  ;;  %p57_p9 = scmp.eq.s32.totalorder %s641_s25, 0 }
  0x3d   : > { %s935_s10 = smov (%p42_p6, %s40_s10), 0  ;;  %p921_p13 = scmp.ne.s32.totalorder %s915_s29, 0 }
  0x3e   : > { %p770_p11 = por %p57_p9, %p56_p7  ;;  %s44_s9 = ssub.s32 %s637_s24, %s935_s10 }
  0x3f   : > { %p776_p1 = por %p921_p13, %p56_p7  ;;  %p424_p3 = scmp.lt.s32.totalorder %s641_s25, 2 }
  0x40   : > { %p47_p2 = scmp.eq.s32.totalorder %s44_s9, 0  ;;  %s148_s8 = sand.u32 1, %s629_s22  }
  0x41   : > { %s389_s12 = sshll.u32 %s148_s8, 3  ;;  %s390_s14 = sshll.u32 %s637_s24, 7 }
  0x42   : > { %s785_s13 = scalar_select %p47_p2, %s629_s22, %s49_s27  }
  0x43   : > { %s791_s17 = scalar_lea.hbm %s907_s2, %s390_s14  ;;  %s152_s29 = scalar_lea.vmem [#allocation5], %s389_s12 }
  0x44   : > { %s160_s18 = sshll.u32 %s152_s29, 4  ;;  %p797_p4 = pnand %p424_p3, %p770_p11  ;;  %s793_s18 = int_to_ptr.vmem [resolvable:$true] %s160_s18 }
  0x45   : > { %s149_s20 = scalar_lea.sflag [#allocation6], %s148_s8  ;;  %s523_s21 = scalar_lea.hbm %s791_s17, 128 }
  0x46   : > { %p524_p5 = scmp.ne.s32.totalorder %s791_s17, %s523_s21  ;;  %p525_p8 = pneg %p797_p4 }
  0x47   : > { %s528_s9 = scalar_lea.hbm %s907_s2, 256  ;;  %p529_p0 = scmp.lt.u32.totalorder %s791_s17, %s907_s2 }
  0x48   : > { %p526_p10 = pnand %p525_p8, %p524_p5  ;;  %p530_p6 = scmp.lt.u32.totalorder %s528_s9, %s523_s21 }
  0x49   : > { %p532_p9 = scmp.lt.u32.totalorder %s523_s21, %s791_s17 }
  0x4a   : > { %p527_p12 = pneg %p526_p10  ;;  %p531_p7 = por %p530_p6, %p529_p0 }
  0x4c   : > { %p533_p11 = por %p532_p9, %p531_p7 }
  0x4e   : > { %p534_p13 = pnand %p533_p11, %p527_p12 }
  0x50   : > { %537 = shalt.err (!%p534_p13)
}
  0x51   : > { %s538_s8 = scalar_lea.vmem %s793_s18, 128  ;;  %s647_s14 = smov [#allocation5]  }
  0x52   : > { %p539_p3 = scmp.ne.s32.totalorder %s793_s18, %s538_s8  ;;  %s543_s15 = sshll.u32 %s647_s14, 4  ;;  %s544_s15 = int_to_ptr.vmem [resolvable:$false] %s543_s15 }
  0x53   : > { %s545_s16 = scalar_lea.vmem %s544_s15, 256  ;;  %p546_p10 = scmp.lt.s32.totalorder %s793_s18, %s544_s15 }
  0x54   : > { %p541_p2 = pnand %p539_p3, %p525_p8  ;;  %p547_p0 = scmp.lt.s32.totalorder %s545_s16, %s538_s8 }
  0x56   : > { %p542_p5 = pneg %p541_p2  ;;  %p548_p6 = por %p547_p0, %p546_p10 }
  0x58   : > { %p549_p7 = pnand %p548_p6, %p542_p5 }
  0x5a   : > { %552 = shalt.err (!%p549_p7)
}
  0x5b   : > { %418 = dma.hbm_to_vmem [thread:$0]  (!%p797_p4), %s791_s17, 128, %s793_s18, %s149_s20  }
  0x5c   : > { %p924_p12 = scmp.ne.s32.totalorder %s918_s6, 0 }
  0x5d   : > { %s829_s29 = sand.u32 (!%p924_p12), 1, %s625_s1   ;;  %p925_p8 = scmp.ne.s32.totalorder (!%p924_p12), %s916_s30, 0 }
  0x5e   : > { %169 = sbr.rel (%p924_p12) target bundleno = 193 (0xc1), region = 28  ;;  %s392_s21 = sshll.u32 (!%p924_p12), %s829_s29, 3 }
  0x5f   : > { %s172_s26 = scalar_lea.sflag (!%p924_p12), [#allocation6], %s829_s29  ;;  %s835_s27 = scalar_lea.vmem (!%p924_p12), [#allocation5], %s392_s21 }
  0x65   : > { %608 = dma.done.wait (%p925_p8), %s172_s26, 128  }
  0x66   : > { %610 = vsyncadd (%p925_p8), %s172_s26, 4294967168  ;;  %p926_p4 = scmp.ne.s32.totalorder %s914_s28, 0 }
  0x68   : > { %612 = dma.done.wait (%p926_p4), [#allocation9], 512  }
  0x69   : > { %614 = vsyncadd (%p926_p4), [#allocation9], 4294966784  ;;  %v206_v0 = vlaneseq  ;;  %s200_s6 = sld [smem:[#allocation3]]  ;;  %s202_s17 = smul.u32 2246822519, %s633_s23  ;;  %v272_v58 = vld [vmem:[%s835_s27] sm:$0xff] }
  0x6a   : > { %s267_s28 = sld [smem:[#allocation4 + %s633_s23]]  ;;  %s199_s9 = scalar_lea.vmem [#allocation10], %s392_s21 }
  0x6b   : > { %v207_v1 = vshrl.u32 %v206_v0, 7  ;;  %v209_v2 = vand.u32 127, %v206_v0  ;;  %s291_s7 = sshll.u32 %s199_s9, 4  ;;  %s400_s12 = sshll.u32 %s633_s23, 7  ;;  %s853_s7 = int_to_ptr.vmem [resolvable:$true] %s291_s7 }
  0x6c   : > { %s858_s15 = scalar_lea.hbm %s909_s4, %s400_s12  ;;  %s277_s16 = scalar_lea.sflag [#allocation7], %s829_s29 }
  0x6d   : > { %v210_v3 = vmul.u32 128, %v207_v1  ;;  %s553_s26 = scalar_lea.vmem %s853_s7, 128  ;;  %s648_s23 = smov [#allocation10]  }
  0x6e   : > { %p554_p9 = scmp.ne.s32.totalorder %s853_s7, %s553_s26  ;;  %s557_s21 = sshll.u32 %s648_s23, 4  ;;  %s558_s21 = int_to_ptr.vmem [resolvable:$false] %s557_s21 }
  0x6f   : > { %s201_s18 = smul.u32 2654435761, %s200_s6  ;;  %v211_v4 = vadd.s32 %v210_v3, %v209_v2  ;;  %s559_s27 = scalar_lea.vmem %s558_s21, 256 }
  0x70   : > { %s398_s30 = sshll.u32 %s267_s28, 3  ;;  %p555_p11 = pnand %p554_p9, %p776_p1 }
  0x71   : > { %s203_s19 = sadd.s32 %s202_s17, %s201_s18  ;;  %s270_s20 = scalar_lea.vmem [#allocation8], %s398_s30 }
  0x72   : > { %v212_v5 = vstv %s203_s19  ;;  %v271_v56 = vld [vmem:[%s270_s20] sm:$0xff]  ;;  %p556_p13 = pneg %p555_p11  ;;  %p560_p3 = scmp.lt.s32.totalorder %s853_s7, %s558_s21 }
  0x73   : > { %v213_v6 = vadd.s32 %v212_v5, %v211_v4  ;;  %p561_p2 = scmp.lt.s32.totalorder %s559_s27, %s553_s26 }
  0x75   : > { %v214_v7 = vshrl.u32 %v213_v6, 16  ;;  %v226_v8 = vxor.u32 668265263, %v213_v6  ;;  %p562_p5 = por %p561_p2, %p560_p3 }
  0x77   : > { %v215_v9 = vxor.u32 %v214_v7, %v213_v6  ;;  %v227_v10 = vshrl.u32 %v226_v8, 16  ;;  %p563_p10 = pnand %p562_p5, %p556_p13 }
  0x79   : > { %v216_v11 = vmul.u32 2246822507, %v215_v9  ;;  %v228_v12 = vxor.u32 %v227_v10, %v226_v8 }
  0x7b   : > { %v217_v13 = vshrl.u32 %v216_v11, 13  ;;  %v229_v14 = vmul.u32 2246822507, %v228_v12 }
  0x7d   : > { %v218_v15 = vxor.u32 %v217_v13, %v216_v11  ;;  %v230_v16 = vshrl.u32 %v229_v14, 13 }
  0x7f   : > { %v219_v17 = vmul.u32 3266489909, %v218_v15  ;;  %v231_v18 = vxor.u32 %v230_v16, %v229_v14 }
  0x81   : > { %v220_v19 = vshrl.u32 %v219_v17, 16  ;;  %v232_v20 = vmul.u32 3266489909, %v231_v18 }
  0x83   : > { %v221_v21 = vxor.u32 %v220_v19, %v219_v17  ;;  %v233_v22 = vshrl.u32 %v232_v20, 16 }
  0x85   : > { %v222_v23 = vshrl.u32 %v221_v21, 9  ;;  %v234_v24 = vxor.u32 %v233_v22, %v232_v20 }
  0x87   : > { %v223_v25 = vcvt.s32.f32 %v222_v23  ;;  %v235_v26 = vshrl.u32 %v234_v24, 9 }
  0x89   : > { %v224_v27 = vadd.f32 0.5, %v223_v25  ;;  %v236_v28 = vcvt.s32.f32 %v235_v26 }
  0x8b   : > { %v225_v29 = vmul.f32 1.1920929e-07, %v224_v27  ;;  %v237_v30 = vadd.f32 0.5, %v236_v28 }
  0x8d   : > { %479 = vlog2.f32 %v225_v29  ;;  %v238_v31 = vmul.f32 1.1920929e-07, %v237_v30 }
  0x8f   : > { %v395_v32 = vadd.f32 -0.5, %v238_v31 }
  0x91   : > { %v250_v33 = vand.u32 2147483647, %v395_v32 }
  0x93   : > { %vm251_vm0 = vcmp.gt.f32.partialorder %v250_v33, 0.25  ;;  %v252_v34 = vsub.f32 0.5, %v250_v33 }
  0x95   : > { %v253_v35 = vsel %vm251_vm0, %v252_v34, %v250_v33 }
  0x96   : > { %v254_v36 = vmul.f32 6.2831855, %v253_v35 }
  0x97   : > { %v480_v37 = vpop.eup %479 }
  0x98   : > { %v240_v38 = vmul.f32 0.6931472, %v480_v37  ;;  %v255_v39 = vmul.f32 %v254_v36, %v254_v36 }
  0x9a   : > { %v241_v40 = vmul.f32 -0.5, %v240_v38  ;;  %v256_v41 = vmul.f32 2.4801588e-05, %v255_v39 }
  0x9c   : > { %481 = vrsqrt.f32 %v241_v40  ;;  %v396_v42 = vadd.f32 -0.0013888889, %v256_v41  ;;  %vm244_vm1 = vcmp.eq.f32.partialorder %v241_v40, inf  ;;  %v247_v49 = vand.u32 2147483648, %v241_v40 }
  0x9d   : > { %vm246_vm2 = vcmp.eq.f32.partialorder %v241_v40, 0.0 }
  0x9e   : > { %v258_v43 = vmul.f32 %v396_v42, %v255_v39 }
  0xa0   : > { %v259_v44 = vadd.f32 0.041666668, %v258_v43 }
  0xa2   : > { %v260_v45 = vmul.f32 %v259_v44, %v255_v39 }
  0xa4   : > { %v397_v46 = vadd.f32 -0.5, %v260_v45 }
  0xa6   : > { %v482_v47 = vpop.eup %481  ;;  %v262_v50 = vmul.f32 %v397_v46, %v255_v39 }
  0xa7   : > { %v243_v48 = vmul.f32 %v482_v47, %v241_v40 }
  0xa8   : > { %v263_v52 = vadd.f32 1.0, %v262_v50 }
  0xa9   : > { %v245_v51 = vsel %vm244_vm1, %v241_v40, %v243_v48 }
  0xaa   : > { %v248_v53 = vsel %vm246_vm2, %v247_v49, %v245_v51  ;;  %v264_v54 = vsub.f32 0.0, %v263_v52 }
  0xac   : > { %v265_v55 = vsel %vm251_vm0, %v263_v52, %v264_v54 }
  0xad   : > { %v266_v57 = vmul.f32 %v265_v55, %v248_v53 }
  0xaf   : > { %v273_v59 = vmul.f32 %v271_v56, %v266_v57 }
  0xb1   : > { %v274_v60 = vadd.f32 %v273_v59, %v272_v58 }
  0xb3   : > { %275 = vst [vmem:[%s199_s9] sm:$0xff] %v274_v60 }
  0xb4   : > { %566 = shalt.err (!%p563_p10)
}
  0xb5   : > { %s567_s29 = scalar_lea.hbm %s858_s15, 128  ;;  %s571_s18 = scalar_lea.hbm %s909_s4, 256 }
  0xb6   : > { %p568_p0 = scmp.ne.s32.totalorder %s858_s15, %s567_s29  ;;  %p572_p12 = scmp.lt.u32.totalorder %s858_s15, %s909_s4 }
  0xb7   : > { %p573_p8 = scmp.lt.u32.totalorder %s571_s18, %s567_s29  ;;  %p575_p9 = scmp.lt.u32.totalorder %s567_s29, %s858_s15 }
  0xb8   : > { %p569_p6 = pnand %p568_p0, %p776_p1 }
  0xb9   : > { %p574_p4 = por %p573_p8, %p572_p12 }
  0xba   : > { %p570_p7 = pneg %p569_p6 }
  0xbb   : > { %p576_p11 = por %p575_p9, %p574_p4 }
  0xbd   : > { %p577_p13 = pnand %p576_p11, %p570_p7 }
  0xbf   : > { %580 = shalt.err (!%p577_p13)
}
  0xc0   : > { %409 = dma.vmem_to_hbm [thread:$0]  (%p776_p1), %s853_s7, 128, %s858_s15, %s277_s16  }
  0xc1 PF: > { %s303_s30 = sand.u32 1, %s621_s0   ;;  %p927_p3 = scmp.ne.s32.totalorder %s917_s5, 0 }
  0xc2   : > { %p928_p2 = scmp.ge.s32.totalorder %s641_s25, 2  ;;  %s304_s20 = scalar_lea.sflag [#allocation7], %s303_s30 }
  0xc4   : > { %p420_p5 = pnand %p928_p2, %p927_p3 }
  0xc6   : > { %616 = dma.done.wait (!%p420_p5), %s304_s20, 128  }
  0xc7   : > { %618 = vsyncadd (!%p420_p5), %s304_s20, 4294967168  ;;  %s28_s25 = sadd.s32 1, %s641_s25   ;;  %s929_s0 = smov %s625_s1 }
  0xc8   : > { %p25_p10 = scmp.ge.s32.totalorder %s28_s25, 4   ;;  %s930_s1 = smov %s629_s22 }
  0xc9   : > { %s931_s22 = smov %s785_s13  ;;  %s932_s23 = smov %s637_s24 }
  0xca   : > { %s933_s24 = smov %s935_s10  ;;  %27 = sbr.rel (!%p25_p10) target bundleno = 22 (0x16), region = 78 }
  0xd1   :  { %309 = vsyncpa [#allocation6], 1 }
  0xd2   :  { %311 = vsyncpa [#allocation6 + $0x1], 1 }
  0xd3   :  { %312 = vsyncpa [#allocation9], 1 }
  0xd4   :  { %313 = vsyncpa [#allocation7], 1 }
  0xd5   :  { %315 = vsyncpa [#allocation7 + $0x1], 1 }

</bundles_post_ra>
